<compile_context>
chip_gen: v7x
topology: tpu7x:2x2x1
jax: 0.10.0
libtpu: 0.0.40
codegen_flags: <defaults>
</compile_context>

<pallas_src>
import functools

import jax
import jax.numpy as jnp
from jax.experimental import pallas as pl
from jax.experimental.pallas import tpu as pltpu

_F32_TINY = float(jnp.finfo(jnp.float32).tiny)


def _atloss_kernel(logits_ref, labels_ref, out_ref, *, K, M):
    x = logits_ref[...].astype(jnp.float32)   # [tm, L]
    y = labels_ref[...].astype(jnp.float32)   # [tm, L]  (0/1 labels)
    tm, L = x.shape
    col = jax.lax.broadcasted_iota(jnp.int32, (tm, L), 1)

    # ---- (K+1)-th largest logit per row (== torch.topk(K+1, sorted)[...,-1]).
    # Iteratively extract the max; between extractions mask exactly ONE
    # occurrence (smallest column index among ties) so duplicates are counted
    # with multiplicity like topk.  No tie-break after the final max.  The
    # first max doubles as the row max for the shared exp.
    work = x
    cur = jnp.max(work, axis=-1, keepdims=True)                 # [tm, 1]
    rowmax = cur
    for _ in range(K):
        amin = jnp.min(jnp.where(work == cur, col, L), axis=-1, keepdims=True)
        work = jnp.where(col == amin, jnp.float32(-jnp.inf), work)
        cur = jnp.max(work, axis=-1, keepdims=True)
    theta = cur + 5.0                                           # [tm, 1]

    # ---- shared-exp log-sum-exps.
    #   lse1 = log(exp(theta) + sum_{label=1} exp(logit))
    #   lse2 = log(exp(theta) + sum_{label=0} exp(logit))
    # tiny-guard prevents -inf/NaN when the shared max is an extreme outlier
    # and the masked sum underflows (e.g. rows with no positive labels).
    m = jnp.maximum(rowmax, theta)                              # [tm, 1]
    e = jnp.exp(x - m)                                          # [tm, L]
    e_th = jnp.exp(theta - m)                                   # [tm, 1]
    sp = jnp.sum(e * y, axis=-1, keepdims=True)                 # positives
    sn = jnp.sum(e * (1.0 - y), axis=-1, keepdims=True)         # negatives (direct)
    lse1 = m + jnp.log(jnp.maximum(e_th + sp, _F32_TINY))
    lse2 = m + jnp.log(jnp.maximum(e_th + sn, _F32_TINY))

    # loss1 = -sum_{label=1}(logit - lse1) = sum(y * (lse1 - x))   (one reduction)
    # loss2 = -(theta - lse2)
    loss1 = jnp.sum(y * (lse1 - x), axis=-1, keepdims=True)
    loss = loss1 + lse2 - theta                                 # [tm, 1]

    # ---- mask rows beyond M (ragged last tile reads unspecified data); the
    # mask must stay AFTER the per-row loss so garbage rows are fully discarded.
    row = jax.lax.broadcasted_iota(jnp.int32, (tm, 1), 0) + pl.program_id(0) * tm
    loss = jnp.where(row < M, loss, 0.0)

    # one lane-dense store of the per-tile partial sum
    out_ref[...] = jnp.full(out_ref.shape, jnp.sum(loss), dtype=jnp.float32)


def _sublane_min(dtype):
    # minimum legal sublane tile for a block of this dtype
    return {4: 8, 2: 16, 1: 32}.get(jnp.dtype(dtype).itemsize, 8)


def _vmem_config():
    """(tile-sizing budget, vmem_limit_bytes) gated per TPU generation."""
    try:
        cap = pltpu.get_tpu_info().vmem_capacity_bytes
    except Exception:
        cap = None
    if cap is not None and cap >= 100 * 1024 * 1024:
        # v5e / v6e: 128 MiB physical -> bigger tiles amortize grid-step overhead
        return 16 * 1024 * 1024, 64 * 1024 * 1024
    # v7x (64 MiB physical) or unknown: conservative sizing
    return 10 * 1024 * 1024, 40 * 1024 * 1024


def _choose_tile(M, L, tile_m, in_dtypes, vmem_budget):
    sub = max(_sublane_min(d) for d in in_dtypes)
    padded_l = ((L + 127) // 128) * 128          # VMEM pads the lane dim to 128
    # 2 inputs x double-buffered + ~8 f32-wide temps (x, y, work, e, col, fused)
    in_bytes = sum(2 * jnp.dtype(d).itemsize for d in in_dtypes) * padded_l
    tmp_bytes = 8 * 4 * padded_l
    bytes_per_row = in_bytes + tmp_bytes
    cap = max(sub, (vmem_budget // bytes_per_row) // sub * sub)
    tm = min(tile_m, cap)
    if tm >= M:
        if M <= 64:
            return M                              # single full-extent tile (always legal)
        # keep >= 2 tiles so the "parallel" axis can shard across v7x's 2 TCs
        half = (M + 1) // 2
        return ((half + sub - 1) // sub) * sub
    return max(sub, (tm // sub) * sub)


def at_loss(logits, labels, K, *, tile_m=1024):
    """Pallas implementation of ATLoss.forward.  logits/labels: [B, N, L]."""
    B, N, L = labels.shape
    assert logits.shape == (B, N, L)
    assert K + 1 <= L
    M = B * N

    # reshape only (no copy); dtype casting happens in-kernel so no f32 / padded
    # copies of the inputs are ever materialized in HBM.  Callers may pass
    # bf16 logits / int8 labels to cut HBM read bytes further.
    lg = logits.reshape(M, L)
    lb = labels.reshape(M, L)

    vmem_budget, vmem_limit = _vmem_config()
    tm = _choose_tile(M, L, tile_m, (lg.dtype, lb.dtype), vmem_budget)
    grid = pl.cdiv(M, tm)

    per_tile = pl.pallas_call(
        functools.partial(_atloss_kernel, K=K, M=M),
        out_shape=jax.ShapeDtypeStruct((grid, 8, 128), jnp.float32),
        grid_spec=pltpu.PrefetchScalarGridSpec(
            num_scalar_prefetch=0,
            grid=(grid,),
            in_specs=[
                pl.BlockSpec((tm, L), lambda i: (i, 0)),
                pl.BlockSpec((tm, L), lambda i: (i, 0)),
            ],
            out_specs=pl.BlockSpec((1, 8, 128), lambda i: (i, 0, 0)),
        ),
        compiler_params=pltpu.CompilerParams(
            dimension_semantics=("parallel",),      # shards tiles across v7x TCs
            vmem_limit_bytes=vmem_limit,
        ),
    )(lg, lb)

    # tiny final reduction of per-tile partial sums (scalar JAX glue)
    return jnp.sum(per_tile[:, 0, 0]) / jnp.float32(M)


def _at_loss_reference(logits, labels, K):
    """Pure-JAX transliteration of the torch forward, for a sanity check."""
    B, N, L = labels.shape
    logits = logits.astype(jnp.float32)
    labels = labels.astype(jnp.float32)
    values = -jnp.sort(-logits, axis=-1)[:, :, : K + 1]
    theta = values[:, :, -1:] + 5.0
    lg = jnp.concatenate([theta, logits], axis=-1).reshape(B * N, -1)
    lb = jnp.concatenate([jnp.zeros_like(labels[:, :, :1]), labels], axis=-1)
    lb = lb.reshape(B * N, -1)
    th_label = jnp.zeros_like(lb).at[:, 0].set(1.0)
    lb = lb.at[:, 0].set(0.0)
    p_mask = lb + th_label
    n_mask = 1.0 - lb
    logit1 = lg - (1.0 - p_mask) * 1e30
    loss1 = -jnp.sum(jax.nn.log_softmax(logit1, axis=-1) * lb, axis=1)
    logit2 = lg - (1.0 - n_mask) * 1e30
    loss2 = -jnp.sum(jax.nn.log_softmax(logit2, axis=-1) * th_label, axis=1)
    return jnp.mean(loss1 + loss2)


if __name__ == "__main__":
    key = jax.random.PRNGKey(0)
    k1, k2, k3, k4, k5, k6, k7, k8 = jax.random.split(key, 8)

    # 1) small shape consistent with the module: [B, N, L], f32, single tile
    B, N, L, K = 2, 8, 32, 4
    logits = jax.random.normal(k1, (B, N, L), dtype=jnp.float32) * 2.0
    labels = jax.random.bernoulli(k2, p=0.15, shape=(B, N, L)).astype(jnp.float32)
    loss = at_loss(logits, labels, K)
    jax.block_until_ready(loss)
    ref = _at_loss_reference(logits, labels, K)
    assert jnp.allclose(loss, ref, rtol=1e-4, atol=1e-3), (loss, ref)

    # 2) multi-tile grid + ragged last-tile mask
    B2, N2, L2, K2 = 3, 7, 32, 2
    lg2 = jax.random.normal(k3, (B2, N2, L2), dtype=jnp.float32) * 2.0
    lb2 = jax.random.bernoulli(k4, p=0.2, shape=(B2, N2, L2)).astype(jnp.float32)
    loss2 = at_loss(lg2, lb2, K2, tile_m=8)
    jax.block_until_ready(loss2)
    ref2 = _at_loss_reference(lg2, lb2, K2)
    assert jnp.allclose(loss2, ref2, rtol=1e-4, atol=1e-3), (loss2, ref2)

    # 3) bf16 logits + int8 labels (reduced HBM traffic), M > 64 exercises the
    #    two-tile split + dtype-aware sublane rounding + non-128 L
    B3, N3, L3, K3 = 2, 40, 97, 3
    lg3 = (jax.random.normal(k5, (B3, N3, L3), dtype=jnp.float32) * 2.0).astype(jnp.bfloat16)
    lb3 = jax.random.bernoulli(k6, p=0.15, shape=(B3, N3, L3)).astype(jnp.int8)
    loss3 = at_loss(lg3, lb3, K3)
    jax.block_until_ready(loss3)
    ref3 = _at_loss_reference(lg3, lb3, K3)
    assert jnp.allclose(loss3, ref3, rtol=1e-4, atol=1e-2), (loss3, ref3)

    # 4) NaN-guard regression: one row with a huge outlier logit and no positive
    #    labels (shared-exp sums underflow); loss must stay finite and match ref
    B4, N4, L4, K4 = 1, 8, 32, 2
    lg4 = jax.random.normal(k7, (B4, N4, L4), dtype=jnp.float32) * 2.0
    lb4 = jax.random.bernoulli(k8, p=0.2, shape=(B4, N4, L4)).astype(jnp.float32)
    lg4 = lg4.at[0, 0, 0].set(200.0)
    lb4 = lb4.at[0, 0, :].set(0.0)
    loss4 = at_loss(lg4, lb4, K4)
    jax.block_until_ready(loss4)
    ref4 = _at_loss_reference(lg4, lb4, K4)
    assert jnp.isfinite(loss4), loss4
    assert jnp.allclose(loss4, ref4, rtol=1e-4, atol=1e-2), (loss4, ref4)

    print("KERNEL_OK")
</pallas_src>

<mosaic_0001>
module attributes {stable_mosaic.version = 11 : i64} {
  func.func @_atloss_kernel(%arg0: i32, %arg1: memref<16x32xf32, #tpu.memory_space<vmem>>, %arg2: memref<16x32xf32, #tpu.memory_space<vmem>>, %arg3: memref<1x8x128xf32, #tpu.memory_space<vmem>>) attributes {dimension_semantics = [#tpu.dimension_semantics<parallel>], iteration_bounds = array<i64: 1>, scalar_prefetch = 0 : i64, scratch_operands = 0 : i64, tpu.core_type = #tpu.core_type<tc>, window_params = [{transform_indices = @transform_0, window_bounds = array<i64: 16, 32>}, {transform_indices = @transform_1, window_bounds = array<i64: 16, 32>}, {transform_indices = @transform_2, window_bounds = array<i64: 1, 8, 128>}]} {
    %c0 = arith.constant 0 : index
    %c0_0 = arith.constant 0 : index
    %0 = vector.load %arg1[%c0, %c0_0] : memref<16x32xf32, #tpu.memory_space<vmem>>, vector<16x32xf32>
    %c0_1 = arith.constant 0 : index
    %c0_2 = arith.constant 0 : index
    %1 = vector.load %arg2[%c0_1, %c0_2] : memref<16x32xf32, #tpu.memory_space<vmem>>, vector<16x32xf32>
    %2 = tpu.iota {dimensions = array<i32: 1>} : vector<16x32xi32>
    %cst = arith.constant dense<0xFF800000> : vector<16xf32>
    %3 = vector.multi_reduction <maximumf>, %0, %cst [1] : vector<16x32xf32> to vector<16xf32>
    %4 = vector.shape_cast %3 : vector<16xf32> to vector<16x1xf32>
    %5 = vector.broadcast %4 : vector<16x1xf32> to vector<16x32xf32>
    %6 = arith.cmpf oeq, %0, %5 : vector<16x32xf32>
    %c32_i32 = arith.constant 32 : i32
    %7 = vector.broadcast %c32_i32 : i32 to vector<16x32xi32>
    %8 = arith.select %6, %2, %7 : vector<16x32xi1>, vector<16x32xi32>
    %cst_3 = arith.constant dense<2147483647> : vector<16xi32>
    %9 = vector.multi_reduction <minsi>, %8, %cst_3 [1] : vector<16x32xi32> to vector<16xi32>
    %10 = vector.shape_cast %9 : vector<16xi32> to vector<16x1xi32>
    %11 = vector.broadcast %10 : vector<16x1xi32> to vector<16x32xi32>
    %12 = arith.cmpi eq, %2, %11 : vector<16x32xi32>
    %cst_4 = arith.constant 0xFF800000 : f32
    %13 = vector.broadcast %cst_4 : f32 to vector<16x32xf32>
    %14 = arith.select %12, %13, %0 : vector<16x32xi1>, vector<16x32xf32>
    %cst_5 = arith.constant dense<0xFF800000> : vector<16xf32>
    %15 = vector.multi_reduction <maximumf>, %14, %cst_5 [1] : vector<16x32xf32> to vector<16xf32>
    %16 = vector.shape_cast %15 : vector<16xf32> to vector<16x1xf32>
    %17 = vector.broadcast %16 : vector<16x1xf32> to vector<16x32xf32>
    %18 = arith.cmpf oeq, %14, %17 : vector<16x32xf32>
    %c32_i32_6 = arith.constant 32 : i32
    %19 = vector.broadcast %c32_i32_6 : i32 to vector<16x32xi32>
    %20 = arith.select %18, %2, %19 : vector<16x32xi1>, vector<16x32xi32>
    %cst_7 = arith.constant dense<2147483647> : vector<16xi32>
    %21 = vector.multi_reduction <minsi>, %20, %cst_7 [1] : vector<16x32xi32> to vector<16xi32>
    %22 = vector.shape_cast %21 : vector<16xi32> to vector<16x1xi32>
    %23 = vector.broadcast %22 : vector<16x1xi32> to vector<16x32xi32>
    %24 = arith.cmpi eq, %2, %23 : vector<16x32xi32>
    %cst_8 = arith.constant 0xFF800000 : f32
    %25 = vector.broadcast %cst_8 : f32 to vector<16x32xf32>
    %26 = arith.select %24, %25, %14 : vector<16x32xi1>, vector<16x32xf32>
    %cst_9 = arith.constant dense<0xFF800000> : vector<16xf32>
    %27 = vector.multi_reduction <maximumf>, %26, %cst_9 [1] : vector<16x32xf32> to vector<16xf32>
    %28 = vector.shape_cast %27 : vector<16xf32> to vector<16x1xf32>
    %29 = vector.broadcast %28 : vector<16x1xf32> to vector<16x32xf32>
    %30 = arith.cmpf oeq, %26, %29 : vector<16x32xf32>
    %c32_i32_10 = arith.constant 32 : i32
    %31 = vector.broadcast %c32_i32_10 : i32 to vector<16x32xi32>
    %32 = arith.select %30, %2, %31 : vector<16x32xi1>, vector<16x32xi32>
    %cst_11 = arith.constant dense<2147483647> : vector<16xi32>
    %33 = vector.multi_reduction <minsi>, %32, %cst_11 [1] : vector<16x32xi32> to vector<16xi32>
    %34 = vector.shape_cast %33 : vector<16xi32> to vector<16x1xi32>
    %35 = vector.broadcast %34 : vector<16x1xi32> to vector<16x32xi32>
    %36 = arith.cmpi eq, %2, %35 : vector<16x32xi32>
    %cst_12 = arith.constant 0xFF800000 : f32
    %37 = vector.broadcast %cst_12 : f32 to vector<16x32xf32>
    %38 = arith.select %36, %37, %26 : vector<16x32xi1>, vector<16x32xf32>
    %cst_13 = arith.constant dense<0xFF800000> : vector<16xf32>
    %39 = vector.multi_reduction <maximumf>, %38, %cst_13 [1] : vector<16x32xf32> to vector<16xf32>
    %40 = vector.shape_cast %39 : vector<16xf32> to vector<16x1xf32>
    %41 = vector.broadcast %40 : vector<16x1xf32> to vector<16x32xf32>
    %42 = arith.cmpf oeq, %38, %41 : vector<16x32xf32>
    %c32_i32_14 = arith.constant 32 : i32
    %43 = vector.broadcast %c32_i32_14 : i32 to vector<16x32xi32>
    %44 = arith.select %42, %2, %43 : vector<16x32xi1>, vector<16x32xi32>
    %cst_15 = arith.constant dense<2147483647> : vector<16xi32>
    %45 = vector.multi_reduction <minsi>, %44, %cst_15 [1] : vector<16x32xi32> to vector<16xi32>
    %46 = vector.shape_cast %45 : vector<16xi32> to vector<16x1xi32>
    %47 = vector.broadcast %46 : vector<16x1xi32> to vector<16x32xi32>
    %48 = arith.cmpi eq, %2, %47 : vector<16x32xi32>
    %cst_16 = arith.constant 0xFF800000 : f32
    %49 = vector.broadcast %cst_16 : f32 to vector<16x32xf32>
    %50 = arith.select %48, %49, %38 : vector<16x32xi1>, vector<16x32xf32>
    %cst_17 = arith.constant dense<0xFF800000> : vector<16xf32>
    %51 = vector.multi_reduction <maximumf>, %50, %cst_17 [1] : vector<16x32xf32> to vector<16xf32>
    %52 = vector.shape_cast %51 : vector<16xf32> to vector<16x1xf32>
    %cst_18 = arith.constant 5.000000e+00 : f32
    %53 = vector.broadcast %cst_18 : f32 to vector<16x1xf32>
    %54 = arith.addf %52, %53 : vector<16x1xf32>
    %55 = arith.maximumf %4, %54 : vector<16x1xf32>
    %56 = vector.broadcast %55 : vector<16x1xf32> to vector<16x32xf32>
    %57 = arith.subf %0, %56 : vector<16x32xf32>
    %58 = math.exp %57 : vector<16x32xf32>
    %59 = arith.subf %54, %55 : vector<16x1xf32>
    %60 = math.exp %59 : vector<16x1xf32>
    %61 = arith.mulf %58, %1 : vector<16x32xf32>
    %cst_19 = arith.constant dense<0.000000e+00> : vector<16xf32>
    %62 = vector.multi_reduction <add>, %61, %cst_19 [1] : vector<16x32xf32> to vector<16xf32>
    %63 = vector.shape_cast %62 : vector<16xf32> to vector<16x1xf32>
    %cst_20 = arith.constant 1.000000e+00 : f32
    %64 = vector.broadcast %cst_20 : f32 to vector<16x32xf32>
    %65 = arith.subf %64, %1 : vector<16x32xf32>
    %66 = arith.mulf %58, %65 : vector<16x32xf32>
    %cst_21 = arith.constant dense<0.000000e+00> : vector<16xf32>
    %67 = vector.multi_reduction <add>, %66, %cst_21 [1] : vector<16x32xf32> to vector<16xf32>
    %68 = vector.shape_cast %67 : vector<16xf32> to vector<16x1xf32>
    %69 = arith.addf %60, %63 : vector<16x1xf32>
    %cst_22 = arith.constant 1.17549435E-38 : f32
    %70 = vector.broadcast %cst_22 : f32 to vector<16x1xf32>
    %71 = arith.maximumf %69, %70 : vector<16x1xf32>
    %72 = math.log %71 : vector<16x1xf32>
    %73 = arith.addf %55, %72 : vector<16x1xf32>
    %74 = arith.addf %60, %68 : vector<16x1xf32>
    %cst_23 = arith.constant 1.17549435E-38 : f32
    %75 = vector.broadcast %cst_23 : f32 to vector<16x1xf32>
    %76 = arith.maximumf %74, %75 : vector<16x1xf32>
    %77 = math.log %76 : vector<16x1xf32>
    %78 = arith.addf %55, %77 : vector<16x1xf32>
    %79 = vector.broadcast %73 : vector<16x1xf32> to vector<16x32xf32>
    %80 = arith.subf %79, %0 : vector<16x32xf32>
    %81 = arith.mulf %1, %80 : vector<16x32xf32>
    %cst_24 = arith.constant dense<0.000000e+00> : vector<16xf32>
    %82 = vector.multi_reduction <add>, %81, %cst_24 [1] : vector<16x32xf32> to vector<16xf32>
    %83 = vector.shape_cast %82 : vector<16xf32> to vector<16x1xf32>
    %84 = arith.addf %83, %78 : vector<16x1xf32>
    %85 = arith.subf %84, %54 : vector<16x1xf32>
    %86 = tpu.iota {dimensions = array<i32: 0>} : vector<16x1xi32>
    %c16_i32 = arith.constant 16 : i32
    %87 = arith.muli %arg0, %c16_i32 : i32
    %88 = vector.broadcast %87 : i32 to vector<16x1xi32>
    %89 = arith.addi %86, %88 : vector<16x1xi32>
    %c16_i32_25 = arith.constant 16 : i32
    %90 = vector.broadcast %c16_i32_25 : i32 to vector<16x1xi32>
    %91 = arith.cmpi slt, %89, %90 : vector<16x1xi32>
    %cst_26 = arith.constant 0.000000e+00 : f32
    %92 = vector.broadcast %cst_26 : f32 to vector<16x1xf32>
    %93 = arith.select %91, %85, %92 : vector<16x1xi1>, vector<16x1xf32>
    %94 = vector.shape_cast %93 : vector<16x1xf32> to vector<1x16x1xf32>
    %cst_27 = arith.constant dense<0.000000e+00> : vector<1xf32>
    %95 = vector.multi_reduction <add>, %94, %cst_27 [1, 2] : vector<1x16x1xf32> to vector<1xf32>
    %96 = vector.shape_cast %95 : vector<1xf32> to vector<1x1x1xf32>
    %97 = vector.extract %96[0, 0, 0] : f32 from vector<1x1x1xf32>
    %98 = vector.broadcast %97 : f32 to vector<1x8x128xf32>
    %c0_28 = arith.constant 0 : index
    %c0_29 = arith.constant 0 : index
    %c0_30 = arith.constant 0 : index
    %99 = vector.load %arg3[%c0_28, %c0_29, %c0_30] : memref<1x8x128xf32, #tpu.memory_space<vmem>>, vector<1x8x128xf32>
    tpu.vector_store %arg3[%c0_28, %c0_29, %c0_30], %98 {strides = array<i32>} : memref<1x8x128xf32, #tpu.memory_space<vmem>>, vector<1x8x128xf32>,
    return
  }
  func.func @transform_0(%arg0: i32) -> (i32, i32) {
    %c0_i32 = arith.constant 0 : i32
    %c0_i32_0 = arith.constant 0 : i32
    return %arg0, %c0_i32 : i32, i32
  }
  func.func @transform_1(%arg0: i32) -> (i32, i32) {
    %c0_i32 = arith.constant 0 : i32
    %c0_i32_0 = arith.constant 0 : i32
    return %arg0, %c0_i32 : i32, i32
  }
  func.func @transform_2(%arg0: i32) -> (i32, i32, i32) {
    %c0_i32 = arith.constant 0 : i32
    %c0_i32_0 = arith.constant 0 : i32
    %c0_i32_1 = arith.constant 0 : i32
    return %arg0, %c0_i32, %c0_i32_0 : i32, i32, i32
  }
}

</mosaic_0001>

<bundles_post_ra>
// kernel: tpu_custom_call.1
= control target key start
LH: loop header
LB: loop body
LE: loop exit
PB: predicated region body
PF: predicated region fallthrough
CT: control target
= control target key end

     0   :  { %7 = vsyncpa [#allocation3], 0  ;;  %s576_s0 = inlined_call_operand.hbm [shape: f32[16,32], index: 0, kind: input, shape index: {}]   ;;  %s577_s1 = inlined_call_operand.hbm [shape: f32[16,32], index: 1, kind: input, shape index: {}]   ;;  %s578_s2 = inlined_call_operand.hbm [shape: f32[1,8,128], index: 2, kind: output, shape index: {}]  }
   0x1   :  { %8 = vsyncpa [#allocation6], 0 }
   0x2   :  { %9 = vsyncpa [#allocation4], 0  ;;  %s434_s9 = smov [#allocation2]   ;;  %s362_s13 = scalar_lea.hbm %s576_s0, 256 }
   0x3   :  { %s15_s10 = sshll.u32 %s434_s9, 4  ;;  %p363_p0 = scmp.ne.s32.totalorder %s576_s0, %s362_s13  ;;  %s16_s10 = int_to_ptr.vmem [resolvable:$true] %s15_s10 }
   0x4   :  { %p366_p1 = scmp.lt.u32.totalorder %s362_s13, %s576_s0 }
   0x6   :  { %p368_p2 = pnand %p366_p1, %p363_p0 }
   0x8   :  { %371 = shalt.err (!%p368_p2)
}
   0x9   :  { %s372_s18 = scalar_lea.vmem %s16_s10, 256  ;;  %p377_p4 = scmp.lt.s32.totalorder %s16_s10, %s16_s10 }
   0xa   :  { %p373_p3 = scmp.ne.s32.totalorder %s16_s10, %s372_s18  ;;  %p378_p5 = scmp.lt.s32.totalorder %s372_s18, %s372_s18 }
   0xc   :  { %p379_p6 = por %p378_p5, %p377_p4 }
   0xe   :  { %p380_p7 = pnand %p379_p6, %p373_p3 }
  0x10   :  { %383 = shalt.err (!%p380_p7)
}
  0x11   :  { %s435_s19 = smov 128   ;;  %s436_s20 = smov 8  }
  0x12   :  { %21 = dma.hbm_to_vmem [thread:$0]  %s576_s0, 256, %s16_s10, [#allocation3], %s435_s19, %s435_s19, %s436_s20  }
  0x13   :  { %s437_s23 = smov [#allocation5]   ;;  %s384_s27 = scalar_lea.hbm %s577_s1, 256 }
  0x14   :  { %s27_s24 = sshll.u32 %s437_s23, 4  ;;  %p385_p8 = scmp.ne.s32.totalorder %s577_s1, %s384_s27  ;;  %s28_s24 = int_to_ptr.vmem [resolvable:$true] %s27_s24 }
  0x15   :  { %p388_p9 = scmp.lt.u32.totalorder %s384_s27, %s577_s1 }
  0x17   :  { %p390_p10 = pnand %p388_p9, %p385_p8 }
  0x19   :  { %393 = shalt.err (!%p390_p10)
}
  0x1a   :  { %s394_s4 = scalar_lea.vmem %s28_s24, 256  ;;  %p399_p12 = scmp.lt.s32.totalorder %s28_s24, %s28_s24 }
  0x1b   :  { %p395_p11 = scmp.ne.s32.totalorder %s28_s24, %s394_s4  ;;  %p400_p13 = scmp.lt.s32.totalorder %s394_s4, %s394_s4 }
  0x1d   :  { %p401_p0 = por %p400_p13, %p399_p12 }
  0x1f   :  { %p402_p1 = pnand %p401_p0, %p395_p11 }
  0x21   :  { %405 = shalt.err (!%p402_p1)
}
  0x22   :  { %33 = dma.hbm_to_vmem [thread:$0]  %s577_s1, 256, %s28_s24, [#allocation6], %s435_s19, %s435_s19, %s436_s20  }
  0x23   :  { %428 = dma.done.wait [#allocation3], 256  }
  0x24   :  { %429 = vsyncadd [#allocation3], 4294967040 }
  0x25   :  { %430 = dma.done.wait [#allocation6], 256  }
  0x26   :  { %431 = vsyncadd [#allocation6], 4294967040  ;;  %vm46_vm0 = vcmask 261120   ;;  %v478_v0 = vld [vmem:[#allocation2] sm:$0xff]  ;;  %v480_v1 = vld [vmem:[#allocation2 + $0x8] sm:$0xff]  ;;  %v44_v4 = vlaneseq  ;;  %s438_s1 = smov [#allocation7]  }
  0x27   :  { %v47_v2 = vsel %vm46_vm0, %v478_v0, -inf  ;;  %v50_v3 = vsel %vm46_vm0, %v480_v1, -inf  ;;  %s329_s6 = sshll.u32 %s438_s1, 4  ;;  %s330_s6 = int_to_ptr.vmem [resolvable:$true] %s329_s6 }
  0x28   :  { %48 = vmax.xlane.f32.xlu0 %v47_v2  ;;  %v486_v5 = vand.u32 127, %v44_v4  ;;  %s406_s8 = scalar_lea.vmem %s330_s6, 128  ;;  %p411_p3 = scmp.lt.s32.totalorder %s330_s6, %s330_s6 }
  0x29   :  { %p407_p2 = scmp.ne.s32.totalorder %s330_s6, %s406_s8  ;;  %p412_p4 = scmp.lt.s32.totalorder %s406_s8, %s406_s8 }
  0x2b   :  { %p413_p5 = por %p412_p4, %p411_p3 }
  0x2c   :  { %51 = vmax.xlane.f32.xlu0 %v50_v3 }
  0x2d   :  { %p414_p6 = pnand %p413_p5, %p407_p2 }
  0xb5   :  { %v488_v6 = vpop.xlane.xlu0 %48 }
  0xb6   :  { %vm53_vm1 = vcmp.eq.f32.partialorder %v478_v0, %v488_v6 }
  0xb7   :  { %v55_v7 = vsel %vm53_vm1, %v486_v5, 32 }
  0xb8   :  { %v57_v8 = vsel %vm46_vm0, %v55_v7, 2147483647 }
  0xb9   :  { %v494_v9 = vpop.xlane.xlu0 %51  ;;  %v59_v10 = vshra.s32 %v57_v8, 16  ;;  %v58_v16 = vand.u32 65535, %v57_v8 }
  0xba   :  { %vm54_vm2 = vcmp.eq.f32.partialorder %v480_v1, %v494_v9 }
  0xbb   :  { %v56_v11 = vsel %vm54_vm2, %v486_v5, 32  ;;  %v61_v12 = vcvt.s32.f32 %v59_v10  ;;  %v60_v18 = vcvt.s32.f32 %v58_v16 }
  0xbc   :  { %v72_v13 = vsel %vm46_vm0, %v56_v11, 2147483647 }
  0xbd   :  { %62 = vmin.xlane.f32.xlu1 %v61_v12  ;;  %v74_v14 = vshra.s32 %v72_v13, 16  ;;  %v73_v19 = vand.u32 65535, %v72_v13 }
  0xbf   :  { %v76_v15 = vcvt.s32.f32 %v74_v14  ;;  %v75_v22 = vcvt.s32.f32 %v73_v19 }
  0xc1   :  { %77 = vmin.xlane.f32.xlu1 %v76_v15 }
 0x14a   :  { %v63_v17 = vpop.xlane.xlu1 %62 }
 0x14b   :  { %vm64_vm3 = vcmp.eq.f32.partialorder %v61_v12, %v63_v17  ;;  %v69_v24 = vcvt.f32.s32 %v63_v17 }
 0x14c   :  { %v65_v20 = vsel %vm64_vm3, %v60_v18, inf }
 0x14d   :  { %66 = vmin.xlane.f32.xlu0 %v65_v20  ;;  %v70_v26 = vshll.u32 %v69_v24, 16 }
 0x14e   :  { %v78_v21 = vpop.xlane.xlu1 %77 }
 0x14f   :  { %vm79_vm4 = vcmp.eq.f32.partialorder %v76_v15, %v78_v21  ;;  %v84_v27 = vcvt.f32.s32 %v78_v21 }
 0x150   :  { %v80_v23 = vsel %vm79_vm4, %v75_v22, inf }
 0x151   :  { %81 = vmin.xlane.f32.xlu1 %v80_v23  ;;  %v85_v31 = vshll.u32 %v84_v27, 16 }
 0x1da   :  { %v67_v25 = vpop.xlane.xlu0 %66 }
 0x1db   :  { %v68_v28 = vcvt.f32.s32 %v67_v25 }
 0x1dd   :  { %v71_v29 = vadd.s32 %v70_v26, %v68_v28 }
 0x1de   :  { %v82_v30 = vpop.xlane.xlu1 %81 }
 0x1df   :  { %v83_v32 = vcvt.f32.s32 %v82_v30  ;;  %vm87_vm5 = vcmp.eq.s32.totalorder %v486_v5, %v71_v29 }
 0x1e0   :  { %v89_v33 = vsel %vm87_vm5, -inf, %v478_v0 }
 0x1e1   :  { %v86_v34 = vadd.s32 %v85_v31, %v83_v32  ;;  %v91_v35 = vsel %vm46_vm0, %v89_v33, -inf }
 0x1e2   :  { %92 = vmax.xlane.f32.xlu0 %v91_v35 }
 0x1e3   :  { %vm88_vm6 = vcmp.eq.s32.totalorder %v486_v5, %v86_v34 }
 0x1e4   :  { %v90_v36 = vsel %vm88_vm6, -inf, %v480_v1 }
 0x1e5   :  { %v94_v37 = vsel %vm46_vm0, %v90_v36, -inf }
 0x1e6   :  { %95 = vmax.xlane.f32.xlu1 %v94_v37 }
 0x26f   :  { %v93_v38 = vpop.xlane.xlu0 %92 }
 0x270   :  { %vm97_vm7 = vcmp.eq.f32.partialorder %v89_v33, %v93_v38 }
 0x271   :  { %v99_v39 = vsel %vm97_vm7, %v486_v5, 32 }
 0x272   :  { %v101_v40 = vsel %vm46_vm0, %v99_v39, 2147483647 }
 0x273   :  { %v96_v41 = vpop.xlane.xlu1 %95  ;;  %v103_v42 = vshra.s32 %v101_v40, 16  ;;  %v102_v48 = vand.u32 65535, %v101_v40 }
 0x274   :  { %vm98_vm8 = vcmp.eq.f32.partialorder %v90_v36, %v96_v41 }
 0x275   :  { %v100_v43 = vsel %vm98_vm8, %v486_v5, 32  ;;  %v105_v44 = vcvt.s32.f32 %v103_v42  ;;  %v104_v50 = vcvt.s32.f32 %v102_v48 }
 0x276   :  { %v116_v45 = vsel %vm46_vm0, %v100_v43, 2147483647 }
 0x277   :  { %106 = vmin.xlane.f32.xlu0 %v105_v44  ;;  %v118_v46 = vshra.s32 %v116_v45, 16  ;;  %v117_v51 = vand.u32 65535, %v116_v45 }
 0x279   :  { %v120_v47 = vcvt.s32.f32 %v118_v46  ;;  %v119_v54 = vcvt.s32.f32 %v117_v51 }
 0x27b   :  { %121 = vmin.xlane.f32.xlu1 %v120_v47 }
 0x304   :  { %v107_v49 = vpop.xlane.xlu0 %106 }
 0x305   :  { %vm108_vm9 = vcmp.eq.f32.partialorder %v105_v44, %v107_v49  ;;  %v113_v56 = vcvt.f32.s32 %v107_v49 }
 0x306   :  { %v109_v52 = vsel %vm108_vm9, %v104_v50, inf }
 0x307   :  { %110 = vmin.xlane.f32.xlu0 %v109_v52  ;;  %v114_v58 = vshll.u32 %v113_v56, 16 }
 0x308   :  { %v122_v53 = vpop.xlane.xlu1 %121 }
 0x309   :  { %vm123_vm10 = vcmp.eq.f32.partialorder %v120_v47, %v122_v53  ;;  %v128_v59 = vcvt.f32.s32 %v122_v53 }
 0x30a   :  { %v124_v55 = vsel %vm123_vm10, %v119_v54, inf }
 0x30b   :  { %125 = vmin.xlane.f32.xlu1 %v124_v55  ;;  %v129_v63 = vshll.u32 %v128_v59, 16 }
 0x394   :  { %v111_v57 = vpop.xlane.xlu0 %110 }
 0x395   :  { %v112_v60 = vcvt.f32.s32 %v111_v57 }
 0x397   :  { %v115_v61 = vadd.s32 %v114_v58, %v112_v60 }
 0x398   :  { %v126_v62 = vpop.xlane.xlu1 %125 }
 0x399   :  { %v127_v2 = vcvt.f32.s32 %v126_v62  ;;  %vm131_vm11 = vcmp.eq.s32.totalorder %v486_v5, %v115_v61 }
 0x39a   :  { %v133_v3 = vsel %vm131_vm11, -inf, %v89_v33 }
 0x39b   :  { %v130_v4 = vadd.s32 %v129_v63, %v127_v2  ;;  %v135_v7 = vsel %vm46_vm0, %v133_v3, -inf }
 0x39c   :  { %136 = vmax.xlane.f32.xlu0 %v135_v7 }
 0x39d   :  { %vm132_vm12 = vcmp.eq.s32.totalorder %v486_v5, %v130_v4 }
 0x39e   :  { %v134_v8 = vsel %vm132_vm12, -inf, %v90_v36 }
 0x39f   :  { %v138_v10 = vsel %vm46_vm0, %v134_v8, -inf }
 0x3a0   :  { %139 = vmax.xlane.f32.xlu1 %v138_v10 }
 0x429   :  { %v137_v11 = vpop.xlane.xlu0 %136 }
 0x42a   :  { %vm141_vm13 = vcmp.eq.f32.partialorder %v133_v3, %v137_v11 }
 0x42b   :  { %v143_v12 = vsel %vm141_vm13, %v486_v5, 32 }
 0x42c   :  { %v145_v13 = vsel %vm46_vm0, %v143_v12, 2147483647 }
 0x42d   :  { %v140_v14 = vpop.xlane.xlu1 %139  ;;  %v147_v15 = vshra.s32 %v145_v13, 16  ;;  %v146_v21 = vand.u32 65535, %v145_v13 }
 0x42e   :  { %vm142_vm14 = vcmp.eq.f32.partialorder %v134_v8, %v140_v14 }
 0x42f   :  { %v144_v16 = vsel %vm142_vm14, %v486_v5, 32  ;;  %v149_v17 = vcvt.s32.f32 %v147_v15  ;;  %v148_v23 = vcvt.s32.f32 %v146_v21 }
 0x430   :  { %v160_v18 = vsel %vm46_vm0, %v144_v16, 2147483647 }
 0x431   :  { %150 = vmin.xlane.f32.xlu0 %v149_v17  ;;  %v162_v19 = vshra.s32 %v160_v18, 16  ;;  %v161_v24 = vand.u32 65535, %v160_v18 }
 0x433   :  { %v164_v20 = vcvt.s32.f32 %v162_v19  ;;  %v163_v27 = vcvt.s32.f32 %v161_v24 }
 0x435   :  { %165 = vmin.xlane.f32.xlu1 %v164_v20 }
 0x4be   :  { %v151_v22 = vpop.xlane.xlu0 %150 }
 0x4bf   :  { %vm152_vm15 = vcmp.eq.f32.partialorder %v149_v17, %v151_v22  ;;  %v157_v29 = vcvt.f32.s32 %v151_v22 }
 0x4c0   :  { %v153_v25 = vsel %vm152_vm15, %v148_v23, inf }
 0x4c1   :  { %154 = vmin.xlane.f32.xlu0 %v153_v25  ;;  %v158_v31 = vshll.u32 %v157_v29, 16  ;;  %v42_v25 = vld [vmem:[#allocation5] sm:$0xff] }
 0x4c2   :  { %v166_v26 = vpop.xlane.xlu1 %165 }
 0x4c3   :  { %vm167_vm1 = vcmp.eq.f32.partialorder %v164_v20, %v166_v26  ;;  %v172_v32 = vcvt.f32.s32 %v166_v26 }
 0x4c4   :  { %v168_v28 = vsel %vm167_vm1, %v163_v27, inf  ;;  %v43_v27 = vld [vmem:[#allocation5 + $0x8] sm:$0xff] }
 0x4c5   :  { %169 = vmin.xlane.f32.xlu1 %v168_v28  ;;  %v173_v36 = vshll.u32 %v172_v32, 16 }
 0x54e   :  { %v155_v30 = vpop.xlane.xlu0 %154 }
 0x54f   :  { %v156_v33 = vcvt.f32.s32 %v155_v30 }
 0x551   :  { %v159_v34 = vadd.s32 %v158_v31, %v156_v33  ;;  %v254_v31 = vsub.f32 1.0, %v43_v27 }
 0x552   :  { %v170_v35 = vpop.xlane.xlu1 %169 }
 0x553   :  { %v171_v37 = vcvt.f32.s32 %v170_v35  ;;  %vm175_vm2 = vcmp.eq.s32.totalorder %v486_v5, %v159_v34 }
 0x554   :  { %v177_v38 = vsel %vm175_vm2, -inf, %v133_v3 }
 0x555   :  { %v174_v39 = vadd.s32 %v173_v36, %v171_v37  ;;  %v179_v40 = vsel %vm46_vm0, %v177_v38, -inf }
 0x556   :  { %180 = vmax.xlane.f32.xlu0 %v179_v40 }
 0x557   :  { %vm176_vm3 = vcmp.eq.s32.totalorder %v486_v5, %v174_v39 }
 0x558   :  { %v178_v41 = vsel %vm176_vm3, -inf, %v134_v8 }
 0x559   :  { %v182_v42 = vsel %vm46_vm0, %v178_v41, -inf }
 0x55a   :  { %183 = vmax.xlane.f32.xlu1 %v182_v42 }
 0x5e3   :  { %v181_v43 = vpop.xlane.xlu0 %180 }
 0x5e4   :  { %vm185_vm4 = vcmp.eq.f32.partialorder %v177_v38, %v181_v43 }
 0x5e5   :  { %v187_v44 = vsel %vm185_vm4, %v486_v5, 32 }
 0x5e6   :  { %v189_v45 = vsel %vm46_vm0, %v187_v44, 2147483647 }
 0x5e7   :  { %v184_v46 = vpop.xlane.xlu1 %183  ;;  %v191_v47 = vshra.s32 %v189_v45, 16  ;;  %v190_v53 = vand.u32 65535, %v189_v45 }
 0x5e8   :  { %vm186_vm5 = vcmp.eq.f32.partialorder %v178_v41, %v184_v46 }
 0x5e9   :  { %v188_v48 = vsel %vm186_vm5, %v486_v5, 32  ;;  %v193_v49 = vcvt.s32.f32 %v191_v47  ;;  %v192_v55 = vcvt.s32.f32 %v190_v53 }
 0x5ea   :  { %v204_v50 = vsel %vm46_vm0, %v188_v48, 2147483647 }
 0x5eb   :  { %194 = vmin.xlane.f32.xlu0 %v193_v49  ;;  %v206_v51 = vshra.s32 %v204_v50, 16  ;;  %v205_v56 = vand.u32 65535, %v204_v50 }
 0x5ed   :  { %v208_v52 = vcvt.s32.f32 %v206_v51  ;;  %v207_v59 = vcvt.s32.f32 %v205_v56 }
 0x5ef   :  { %209 = vmin.xlane.f32.xlu1 %v208_v52 }
 0x678   :  { %v195_v54 = vpop.xlane.xlu0 %194 }
 0x679   :  { %vm196_vm6 = vcmp.eq.f32.partialorder %v193_v49, %v195_v54  ;;  %v201_v61 = vcvt.f32.s32 %v195_v54 }
 0x67a   :  { %v197_v57 = vsel %vm196_vm6, %v192_v55, inf }
 0x67b   :  { %198 = vmin.xlane.f32.xlu0 %v197_v57  ;;  %v202_v63 = vshll.u32 %v201_v61, 16 }
 0x67c   :  { %v210_v58 = vpop.xlane.xlu1 %209 }
 0x67d   :  { %vm211_vm7 = vcmp.eq.f32.partialorder %v208_v52, %v210_v58  ;;  %v216_v2 = vcvt.f32.s32 %v210_v58 }
 0x67e   :  { %v212_v60 = vsel %vm211_vm7, %v207_v59, inf }
 0x67f   :  { %213 = vmin.xlane.f32.xlu1 %v212_v60  ;;  %v217_v8 = vshll.u32 %v216_v2, 16 }
 0x708   :  { %v199_v62 = vpop.xlane.xlu0 %198 }
 0x709   :  { %v200_v3 = vcvt.f32.s32 %v199_v62 }
 0x70b   :  { %v203_v4 = vadd.s32 %v202_v63, %v200_v3 }
 0x70c   :  { %v214_v7 = vpop.xlane.xlu1 %213 }
 0x70d   :  { %v215_v10 = vcvt.f32.s32 %v214_v7  ;;  %vm219_vm8 = vcmp.eq.s32.totalorder %v486_v5, %v203_v4 }
 0x70e   :  { %v221_v11 = vsel %vm219_vm8, -inf, %v177_v38 }
 0x70f   :  { %v218_v12 = vadd.s32 %v217_v8, %v215_v10  ;;  %v223_v13 = vsel %vm46_vm0, %v221_v11, -inf }
 0x710   :  { %224 = vmax.xlane.f32.xlu0 %v223_v13 }
 0x711   :  { %vm220_vm9 = vcmp.eq.s32.totalorder %v486_v5, %v218_v12 }
 0x712   :  { %v222_v14 = vsel %vm220_vm9, -inf, %v178_v41 }
 0x713   :  { %v226_v15 = vsel %vm46_vm0, %v222_v14, -inf }
 0x714   :  { %227 = vmax.xlane.f32.xlu1 %v226_v15 }
 0x79d   :  { %v225_v16 = vpop.xlane.xlu0 %224 }
 0x79e   :  { %v530_v17 = vadd.f32 5.0, %v225_v16 }
 0x7a0   :  { %v534_v18 = vmax.f32 %v488_v6, %v530_v17  ;;  %v253_v6 = vsub.f32 1.0, %v42_v25 }
 0x7a1   :  { %v228_v19 = vpop.xlane.xlu1 %227 }
 0x7a2   :  { %v233_v20 = vsub.f32 %v478_v0, %v534_v18  ;;  %v538_v21 = vadd.f32 5.0, %v228_v19  ;;  %v239_v37 = vsub.f32 %v530_v17, %v534_v18 }
 0x7a4   :  { %v235_v22 = vmul.f32 1.442695, %v233_v20  ;;  %v542_v5 = vmax.f32 %v494_v9, %v538_v21  ;;  %v241_v38 = vmul.f32 1.442695, %v239_v37 }
 0x7a6   :  { %v234_v23 = vsub.f32 %v480_v1, %v542_v5  ;;  %346 = vpow2.f32 %v235_v22  ;;  %v240_v39 = vsub.f32 %v538_v21, %v542_v5 }
 0x7a8   :  { %v237_v24 = vmul.f32 1.442695, %v234_v23  ;;  %v243_v40 = vmul.f32 1.442695, %v240_v39 }
 0x7aa   :  { %348 = vpow2.f32 %v237_v24 }
 0x7ab   :  { %350 = vpow2.f32 %v241_v38 }
 0x7ac   :  { %352 = vpow2.f32 %v243_v40 }
 0x7b0   :  { %v347_v26 = vpop.eup %346 }
 0x7b1   :  { %v245_v28 = vmul.f32 %v347_v26, %v42_v25  ;;  %v255_v30 = vmul.f32 %v347_v26, %v253_v6 }
 0x7b3   :  { %v247_v29 = vsel %vm46_vm0, %v245_v28, 0.0  ;;  %v257_v34 = vsel %vm46_vm0, %v255_v30, 0.0 }
 0x7b4   :  { %v349_v32 = vpop.eup %348  ;;  %248 = vadd.xlane.f32.xlu0 %v247_v29 }
 0x7b5   :  { %v246_v33 = vmul.f32 %v349_v32, %v43_v27  ;;  %v256_v35 = vmul.f32 %v349_v32, %v254_v31  ;;  %v351_v41 = vpop.eup %350 }
 0x7b6   :  { %v353_v45 = vpop.eup %352 }
 0x7b7   :  { %v250_v9 = vsel %vm46_vm0, %v246_v33, 0.0  ;;  %v260_v36 = vsel %vm46_vm0, %v256_v35, 0.0 }
 0x7b8   :  { %251 = vadd.xlane.f32.xlu1 %v250_v9  ;;  %258 = vadd.xlane.f32.xlu0 %v257_v34 }
 0x7bc   :  { %261 = vadd.xlane.f32.xlu1 %v260_v36 }
 0x841   :  { %v249_v42 = vpop.xlane.xlu0 %248 }
 0x842   :  { %v263_v43 = vadd.f32 %v351_v41, %v249_v42 }
 0x844   :  { %v265_v44 = vmax.f32 %v263_v43, 1.1754944e-38 }
 0x845   :  { %v252_v46 = vpop.xlane.xlu1 %251  ;;  %v259_v61 = vpop.xlane.xlu0 %258 }
 0x846   :  { %354 = vlog2.f32 %v265_v44  ;;  %v264_v47 = vadd.f32 %v353_v45, %v252_v46  ;;  %v273_v62 = vadd.f32 %v351_v41, %v259_v61 }
 0x848   :  { %v266_v48 = vmax.f32 %v264_v47, 1.1754944e-38  ;;  %v275_v2 = vmax.f32 %v273_v62, 1.1754944e-38 }
 0x849   :  { %v262_v63 = vpop.xlane.xlu1 %261 }
 0x84a   :  { %356 = vlog2.f32 %v266_v48  ;;  %v274_v3 = vadd.f32 %v353_v45, %v262_v63 }
 0x84b   :  { %358 = vlog2.f32 %v275_v2 }
 0x84c   :  { %v276_v4 = vmax.f32 %v274_v3, 1.1754944e-38 }
 0x84e   :  { %360 = vlog2.f32 %v276_v4 }
 0x850   :  { %v355_v49 = vpop.eup %354 }
 0x851   :  { %v268_v50 = vmul.f32 0.6931472, %v355_v49 }
 0x853   :  { %v271_v51 = vadd.f32 %v268_v50, %v534_v18 }
 0x854   :  { %v357_v52 = vpop.eup %356 }
 0x855   :  { %v270_v53 = vmul.f32 0.6931472, %v357_v52  ;;  %v283_v54 = vsub.f32 %v271_v51, %v478_v0  ;;  %v359_v0 = vpop.eup %358 }
 0x856   :  { %v278_v7 = vmul.f32 0.6931472, %v359_v0 }
 0x857   :  { %v272_v55 = vadd.f32 %v270_v53, %v542_v5  ;;  %v285_v56 = vmul.f32 %v283_v54, %v42_v25 }
 0x858   :  { %v361_v8 = vpop.eup %360  ;;  %v281_v11 = vadd.f32 %v278_v7, %v534_v18 }
 0x859   :  { %v287_v57 = vsel %vm46_vm0, %v285_v56, 0.0  ;;  %v284_v58 = vsub.f32 %v272_v55, %v480_v1  ;;  %v280_v10 = vmul.f32 0.6931472, %v361_v8 }
 0x85a   :  { %288 = vadd.xlane.f32.xlu0 %v287_v57 }
 0x85b   :  { %v286_v59 = vmul.f32 %v284_v58, %v43_v27  ;;  %v282_v13 = vadd.f32 %v280_v10, %v542_v5 }
 0x85d   :  { %v290_v60 = vsel %vm46_vm0, %v286_v59, 0.0  ;;  %vm308_vm0 = vcmask 7168  }
 0x85e   :  { %291 = vadd.xlane.f32.xlu1 %v290_v60 }
 0x8e7   :  { %v289_v1 = vpop.xlane.xlu0 %288 }
 0x8e8   :  { %v293_v12 = vadd.f32 %v289_v1, %v281_v11 }
 0x8ea   :  { %v295_v15 = vsub.f32 %v293_v12, %v530_v17 }
 0x8eb   :  { %v292_v14 = vpop.xlane.xlu1 %291 }
 0x8ec   :  { %v294_v16 = vadd.f32 %v292_v14, %v282_v13  ;;  %v309_v20 = vsel %vm308_vm0, %v295_v15, 0.0 }
 0x8ee   :  { %v296_v19 = vsub.f32 %v294_v16, %v538_v21 }
 0x8f0   :  { %v310_v22 = vsel %vm308_vm0, %v296_v19, 0.0 }
 0x8f1   :  { %v311_v23 = vadd.f32 %v310_v22, %v309_v20 }
 0x8f3   :  { %312 = vadd.xlane.f32.xlu0 %v311_v23 }
 0x980   :  { %v313_v24 = vpop.xlane.xlu0 %312 }
 0x981   :  { %v314_v25 = vrot.slane %v313_v24, 4 }
 0x983   :  { %v315_v6 = vadd.f32 %v314_v25, %v313_v24 }
 0x985   :  { %v316_v26 = vrot.slane %v315_v6, 2 }
 0x987   :  { %v317_v18 = vadd.f32 %v316_v26, %v315_v6 }
 0x989   :  { %v318_v27 = vrot.slane %v317_v18, 1 }
 0x98b   :  { %v319_v28 = vadd.f32 %v318_v27, %v317_v18 }
 0x98d   :  { %339 = vpush %v319_v28 }
 0x9be   :  { %s340_s7 = spop %339 }
 0x9bf   :  { %v321_v17 = vstv %s340_s7 }
 0x9c0   :  { %322 = vst [vmem:[#allocation7] sm:$0xff] %v321_v17 }
 0x9c1   :  { %417 = shalt.err (!%p414_p6)
}
 0x9c2   :  { %s418_s11 = scalar_lea.hbm %s578_s2, 128 }
 0x9c3   :  { %p419_p7 = scmp.ne.s32.totalorder %s578_s2, %s418_s11  ;;  %p422_p8 = scmp.lt.u32.totalorder %s418_s11, %s578_s2 }
 0x9c5   :  { %p424_p9 = pnand %p422_p8, %p419_p7 }
 0x9c7   :  { %427 = shalt.err (!%p424_p9)
}
 0x9c8   :  { %332 = dma.vmem_to_hbm [thread:$0]  %s330_s6, 128, %s578_s2, [#allocation4]  }
 0x9c9   :  { %432 = dma.done.wait [#allocation4], 128  }
 0x9ca   :  { %433 = vsyncadd [#allocation4], 4294967168 }
 0x9cb   :  { %336 = vsyncpa [#allocation3], 1 }
 0x9cc   :  { %337 = vsyncpa [#allocation6], 1 }
 0x9cd   :  { %338 = vsyncpa [#allocation4], 1 }

</bundles_post_ra>
